<compile_context>
chip_gen: v7x
topology: tpu7x:2x2x1
jax: 0.10.0
libtpu: 0.0.40
codegen_flags: <defaults>
</compile_context>

<pallas_src>
import jax
import jax.numpy as jnp
from jax import lax
from jax.experimental import pallas as pl
from jax.experimental.pallas import tpu as pltpu

PROJ_TARGET_LEN = 64
HIDDEN = 32
SEQ = 8
BATCH = 2
VOCAB = 100
OUT_LANES = 128


def siamese_kernel(x_ref, w_ref, wenc_ref, wfc_ref, bfc_ref, out_ref):
    # synthetic XLM stand-in, run once on the stacked (2B*S, H+1) batch.
    # encoder bias rides the MXU contraction via the ones column appended in the wrapper.
    h = jnp.tanh(jnp.dot(x_ref[...], wenc_ref[...],
                         preferred_element_type=jnp.float32))              # (2B*S, H)

    two_b, seq, _ = w_ref.shape
    hidden = h.shape[-1]
    # tile-aligned reshape (seq == 8 sublanes): pure re-grouping of the leading dim.
    hb = h.reshape(two_b, seq, hidden)                                      # (2B, S, H)

    # masked mean pooling as a per-sequence weighted reduction (w already holds
    # target*attention/sum(target)); replaces the old block-diagonal MXU matmul.
    avg = jnp.sum(w_ref[...] * hb, axis=1)                                  # (2B, H)

    # fc projection for both sentences at once.
    p = (jnp.dot(avg, wfc_ref[...], preferred_element_type=jnp.float32)
         + bfc_ref[...])                                                    # (2B, P)

    b = two_b // 2
    p1 = p[:b, :]
    p2 = p[b:, :]

    # cosine epilogue: one lane-reduce gives both squared norms, a second gives the dot;
    # denominator via a single EUP rsqrt (eps=1e-8 on norms == 1e-16 on squared norms).
    sq = jnp.sum(p * p, axis=-1, keepdims=True)                             # (2B, 1)
    dotp = jnp.sum(p1 * p2, axis=-1, keepdims=True)                         # (B, 1)
    s11 = sq[:b]
    s22 = sq[b:]
    eps2 = jnp.float32(1e-16)
    cos = dotp * lax.rsqrt(jnp.maximum(s11, eps2) * jnp.maximum(s22, eps2))  # (B, 1)

    # lane-dense store (unmasked along the 128 lanes); wrapper slices column 0.
    # TODO(synk): once >=8 problems are batched per call this becomes a full (8,128) tile.
    out_ref[...] = jnp.broadcast_to(cos, out_ref.shape)


def siamese_forward(params, batch):
    # glue (embedding gather / concat / mask precompute) stays in plain JAX.
    emb1 = params["emb_table"][batch["input_ids_s1"]].astype(jnp.float32)   # (B, S, H)
    emb2 = params["emb_table"][batch["input_ids_s2"]].astype(jnp.float32)
    B, S, H = emb1.shape

    # stack both sentences along batch, flatten to lane-dense 2-D and append a ones
    # column so the encoder bias is folded into the MXU contraction.
    x = jnp.concatenate([emb1, emb2], axis=0).reshape(2 * B * S, H)
    x_aug = jnp.concatenate(
        [x, jnp.ones((2 * B * S, 1), jnp.float32)], axis=-1)                # (2B*S, H+1)
    wenc_aug = jnp.concatenate([params["w_enc"], params["b_enc"]], axis=0)  # (H+1, H)

    am = jnp.concatenate(
        [batch["attention_mask_s1"], batch["attention_mask_s2"]], axis=0
    ).astype(jnp.float32)                                                    # (2B, S)
    tm = jnp.concatenate(
        [batch["target_1_mask"], batch["target_2_mask"]], axis=0
    ).astype(jnp.float32)                                                    # (2B, S)

    # per-token pooling weights: target * attention / sum(target); guarded divide so an
    # all-zero target row cannot push NaN/Inf through the kernel.
    denom = jnp.maximum(jnp.sum(tm, axis=1, keepdims=True), 1.0)
    w = (tm * am / denom)[..., None]                                         # (2B, S, 1)

    vmem = pl.BlockSpec(memory_space=pltpu.MemorySpace.VMEM)
    out = pl.pallas_call(
        siamese_kernel,
        out_shape=jax.ShapeDtypeStruct((B, OUT_LANES), jnp.float32),
        in_specs=[vmem] * 5,
        out_specs=vmem,
    )(x_aug, w, wenc_aug, params["w_fc"], params["b_fc"])
    return out[:, 0]


def reference(params, batch):
    emb1 = params["emb_table"][batch["input_ids_s1"]].astype(jnp.float32)
    emb2 = params["emb_table"][batch["input_ids_s2"]].astype(jnp.float32)
    am1 = batch["attention_mask_s1"].astype(jnp.float32)
    am2 = batch["attention_mask_s2"].astype(jnp.float32)
    tm1 = batch["target_1_mask"].astype(jnp.float32)
    tm2 = batch["target_2_mask"].astype(jnp.float32)

    def enc(emb, am):
        h = jnp.tanh(emb @ params["w_enc"] + params["b_enc"][0])
        return h * am[..., None]

    def avg(h, tm):
        return jnp.sum(tm[..., None] * h, axis=1) / jnp.sum(tm, axis=1, keepdims=True)

    a1 = avg(enc(emb1, am1), tm1)
    a2 = avg(enc(emb2, am2), tm2)
    p1 = a1 @ params["w_fc"] + params["b_fc"][0]
    p2 = a2 @ params["w_fc"] + params["b_fc"][0]
    eps = 1e-8
    return jnp.sum(p1 * p2, -1) / (
        jnp.maximum(jnp.linalg.norm(p1, axis=-1), eps)
        * jnp.maximum(jnp.linalg.norm(p2, axis=-1), eps))


if __name__ == "__main__":
    key = jax.random.PRNGKey(0)
    k_emb, k_enc, k_benc, k_fc, k_bfc, k_id1, k_id2 = jax.random.split(key, 7)

    params = {
        "emb_table": jax.random.normal(k_emb, (VOCAB, HIDDEN), jnp.float32) * 0.1,
        "w_enc": jax.random.normal(k_enc, (HIDDEN, HIDDEN), jnp.float32) * 0.1,
        "b_enc": jax.random.normal(k_benc, (1, HIDDEN), jnp.float32) * 0.1,
        "w_fc": jax.random.normal(k_fc, (HIDDEN, PROJ_TARGET_LEN), jnp.float32) * 0.1,
        "b_fc": jax.random.normal(k_bfc, (1, PROJ_TARGET_LEN), jnp.float32) * 0.1,
    }

    # attention masks: first 6 / 7 tokens valid; target masks: a few positions each.
    am1 = jnp.array([[1, 1, 1, 1, 1, 1, 0, 0],
                     [1, 1, 1, 1, 1, 1, 1, 0]], jnp.int32)
    am2 = jnp.array([[1, 1, 1, 1, 1, 0, 0, 0],
                     [1, 1, 1, 1, 1, 1, 1, 1]], jnp.int32)
    t1 = jnp.array([[0, 1, 1, 0, 0, 0, 0, 0],
                    [0, 0, 1, 1, 1, 0, 0, 0]], jnp.int32)
    t2 = jnp.array([[1, 1, 0, 0, 0, 0, 0, 0],
                    [0, 0, 0, 1, 1, 0, 0, 0]], jnp.int32)

    batch = {
        "input_ids_s1": jax.random.randint(k_id1, (BATCH, SEQ), 0, VOCAB, jnp.int32),
        "attention_mask_s1": am1,
        "input_ids_s2": jax.random.randint(k_id2, (BATCH, SEQ), 0, VOCAB, jnp.int32),
        "attention_mask_s2": am2,
        "target_1_mask": t1,
        "target_2_mask": t2,
    }

    out = jax.block_until_ready(siamese_forward(params, batch))
    ref = jax.block_until_ready(reference(params, batch))
    assert out.shape == (BATCH,)
    assert jnp.allclose(out, ref, atol=1e-5, rtol=1e-5), (out, ref)
    print("KERNEL_OK")
</pallas_src>

<mosaic_0001>
module attributes {stable_mosaic.version = 11 : i64} {
  func.func @siamese_kernel(%arg0: memref<32x33xf32, #tpu.memory_space<vmem>>, %arg1: memref<4x8x1xf32, #tpu.memory_space<vmem>>, %arg2: memref<33x32xf32, #tpu.memory_space<vmem>>, %arg3: memref<32x64xf32, #tpu.memory_space<vmem>>, %arg4: memref<1x64xf32, #tpu.memory_space<vmem>>, %arg5: memref<2x128xf32, #tpu.memory_space<vmem>>) attributes {dimension_semantics = [], scalar_prefetch = 0 : i64, scratch_operands = 0 : i64, tpu.core_type = #tpu.core_type<tc>} {
    %c0 = arith.constant 0 : index
    %c0_0 = arith.constant 0 : index
    %0 = vector.load %arg0[%c0, %c0_0] : memref<32x33xf32, #tpu.memory_space<vmem>>, vector<32x33xf32>
    %c0_1 = arith.constant 0 : index
    %c0_2 = arith.constant 0 : index
    %1 = vector.load %arg2[%c0_1, %c0_2] : memref<33x32xf32, #tpu.memory_space<vmem>>, vector<33x32xf32>
    %cst = arith.constant dense<0.000000e+00> : vector<32x32xf32>
    %2 = tpu.matmul %0, %1, %cst {dimension_numbers = #tpu.dot_dimension_numbers<[1], [0], [0], [1], [0, 0, 1, 1], [], []>} : vector<32x33xf32>, vector<33x32xf32>, vector<32x32xf32> -> vector<32x32xf32>
    %3 = math.tanh %2 : vector<32x32xf32>
    %4 = vector.shape_cast %3 : vector<32x32xf32> to vector<4x8x32xf32>
    %c0_3 = arith.constant 0 : index
    %c0_4 = arith.constant 0 : index
    %c0_5 = arith.constant 0 : index
    %5 = vector.load %arg1[%c0_3, %c0_4, %c0_5] : memref<4x8x1xf32, #tpu.memory_space<vmem>>, vector<4x8x1xf32>
    %6 = vector.broadcast %5 : vector<4x8x1xf32> to vector<4x8x32xf32>
    %7 = arith.mulf %6, %4 : vector<4x8x32xf32>
    %cst_6 = arith.constant dense<0.000000e+00> : vector<4x32xf32>
    %8 = vector.multi_reduction <add>, %7, %cst_6 [1] : vector<4x8x32xf32> to vector<4x32xf32>
    %c0_7 = arith.constant 0 : index
    %c0_8 = arith.constant 0 : index
    %9 = vector.load %arg3[%c0_7, %c0_8] : memref<32x64xf32, #tpu.memory_space<vmem>>, vector<32x64xf32>
    %cst_9 = arith.constant dense<0.000000e+00> : vector<4x64xf32>
    %10 = tpu.matmul %8, %9, %cst_9 {dimension_numbers = #tpu.dot_dimension_numbers<[1], [0], [0], [1], [0, 0, 1, 1], [], []>} : vector<4x32xf32>, vector<32x64xf32>, vector<4x64xf32> -> vector<4x64xf32>
    %c0_10 = arith.constant 0 : index
    %c0_11 = arith.constant 0 : index
    %11 = vector.load %arg4[%c0_10, %c0_11] : memref<1x64xf32, #tpu.memory_space<vmem>>, vector<1x64xf32>
    %12 = vector.broadcast %11 : vector<1x64xf32> to vector<4x64xf32>
    %13 = arith.addf %10, %12 : vector<4x64xf32>
    %14 = vector.extract_strided_slice %13 {offsets = [0, 0], sizes = [2, 64], strides = [1, 1]} : vector<4x64xf32> to vector<2x64xf32>
    %15 = vector.extract_strided_slice %13 {offsets = [2, 0], sizes = [2, 64], strides = [1, 1]} : vector<4x64xf32> to vector<2x64xf32>
    %16 = arith.mulf %13, %13 : vector<4x64xf32>
    %cst_12 = arith.constant dense<0.000000e+00> : vector<4xf32>
    %17 = vector.multi_reduction <add>, %16, %cst_12 [1] : vector<4x64xf32> to vector<4xf32>
    %18 = vector.shape_cast %17 : vector<4xf32> to vector<4x1xf32>
    %19 = arith.mulf %14, %15 : vector<2x64xf32>
    %cst_13 = arith.constant dense<0.000000e+00> : vector<2xf32>
    %20 = vector.multi_reduction <add>, %19, %cst_13 [1] : vector<2x64xf32> to vector<2xf32>
    %21 = vector.shape_cast %20 : vector<2xf32> to vector<2x1xf32>
    %22 = vector.extract_strided_slice %18 {offsets = [0, 0], sizes = [2, 1], strides = [1, 1]} : vector<4x1xf32> to vector<2x1xf32>
    %23 = vector.extract_strided_slice %18 {offsets = [2, 0], sizes = [2, 1], strides = [1, 1]} : vector<4x1xf32> to vector<2x1xf32>
    %cst_14 = arith.constant 1.000000e-16 : f32
    %24 = vector.broadcast %cst_14 : f32 to vector<2x1xf32>
    %25 = arith.maximumf %22, %24 : vector<2x1xf32>
    %cst_15 = arith.constant 1.000000e-16 : f32
    %26 = vector.broadcast %cst_15 : f32 to vector<2x1xf32>
    %27 = arith.maximumf %23, %26 : vector<2x1xf32>
    %28 = arith.mulf %25, %27 : vector<2x1xf32>
    %29 = math.rsqrt %28 : vector<2x1xf32>
    %30 = arith.mulf %21, %29 : vector<2x1xf32>
    %31 = vector.shape_cast %30 : vector<2x1xf32> to vector<2x1xf32>
    %32 = vector.broadcast %31 : vector<2x1xf32> to vector<2x128xf32>
    %c0_16 = arith.constant 0 : index
    %c0_17 = arith.constant 0 : index
    %33 = vector.load %arg5[%c0_16, %c0_17] : memref<2x128xf32, #tpu.memory_space<vmem>>, vector<2x128xf32>
    tpu.vector_store %arg5[%c0_16, %c0_17], %32 {strides = array<i32>} : memref<2x128xf32, #tpu.memory_space<vmem>>, vector<2x128xf32>,
    return
  }
}

</mosaic_0001>

<bundles_post_ra>
// kernel: tpu_custom_call.1
= control target key start
LH: loop header
LB: loop body
LE: loop exit
PB: predicated region body
PF: predicated region fallthrough
CT: control target
= control target key end

     0   :  { %vm30_vm0 = vcmask 269312   ;;  %v429_v6 = vmov 0   ;;  %s539_s0 = inlined_call_operand.vmem [shape: f32[32,33], index: 0, kind: input, shape index: {}]   ;;  %s540_s1 = inlined_call_operand.vmem [shape: f32[4,8,1], index: 1, kind: input, shape index: {}]   ;;  %s541_s2 = inlined_call_operand.vmem [shape: f32[33,32], index: 2, kind: input, shape index: {}]   ;;  %s542_s3 = inlined_call_operand.vmem [shape: f32[32,64], index: 3, kind: input, shape index: {}]   ;;  %s543_s4 = inlined_call_operand.vmem [shape: f32[1,64], index: 4, kind: input, shape index: {}]   ;;  %s544_s5 = inlined_call_operand.hbm [shape: f32[2,128], index: 5, kind: output, shape index: {}]  }
   0x1   :  { %v25_v0 = vld [vmem:[%s541_s2] sm:$0xff]  ;;  %v26_v1 = vld [vmem:[%s541_s2 + $0x8] sm:$0xff]  ;;  %v27_v2 = vld [vmem:[%s541_s2 + $0x10] sm:$0xff]  ;;  %393 = vset.pattern.permute.xlu0 %v429_v6  ;;  %394 = vset.pattern.permute.xlu1 %v429_v6 }
   0x2   :  { %v374_v3 = vpack.c.bf16 %v26_v1, %v25_v0  ;;  %v28_v4 = vld [vmem:[%s541_s2 + $0x18] sm:$0xff]  ;;  %v21_v5 = vld [vmem:[%s539_s0] sm:$0xff]  ;;  %v138_v9 = vld [vmem:[%s540_s1 + $0x10] sm:$0xff] }
   0x3   :  { %v378_v7 = vpack.c.bf16 %v28_v4, %v27_v2  ;;  %357 = vmatprep.mubr.msk.f32.mxu0 %vm30_vm0, %v21_v5  ;;  %v136_v8 = vld [vmem:[%s540_s1] sm:$0xff] }
   0x4   :  { %375 = vmatprep.subr.bf16.mxu0 %v374_v3  ;;  %142 = vperm.xlu0 %393, %v136_v8  }
   0x5   :  { %377 = vmatpush3.bf16.msra.mxu0 %v374_v3 }
   0x6   :  { %10 = vsyncpa [#allocation3], 0  ;;  %379 = vmatprep.subr.bf16.mxu0 %v378_v7  ;;  %152 = vperm.xlu1 %394, %v138_v9   ;;  %v137_v10 = vld [vmem:[%s540_s1 + $0x8] sm:$0xff]  ;;  %v29_v11 = vld [vmem:[%s541_s2 + $0x20] sm:$0x1]  ;;  %vm43_vm1 = vcmask 1040384  }
   0x7   :  { %v139_v12 = vld [vmem:[%s540_s1 + $0x18] sm:$0xff]  ;;  %v22_v13 = vld [vmem:[%s539_s0 + $0x8] sm:$0xff]  ;;  %v23_v14 = vld [vmem:[%s539_s0 + $0x10] sm:$0xff]  ;;  %v430_v19 = vmov 0.0|0.0   ;;  %vm431_vm2 = vmmov 0   ;;  %v432_v23 = vmov 0.0  }
   0x8   :  { %147 = vperm.xlu0 %393, %v137_v10   ;;  %v24_v15 = vld [vmem:[%s539_s0 + $0x18] sm:$0xff]  ;;  %v193_v16 = vld [vmem:[%s542_s3] sm:$0xff]  ;;  %v194_v17 = vld [vmem:[%s542_s3 + $0x8] sm:$0xff]  ;;  %382 = vmatprep.subr.bf16.mxu1 %v430_v19  ;;  %vm164_vm3 = vcmask 261120   ;;  %vm208_vm4 = vcmask 1041409   ;;  %vm210_vm5 = vcmask 1042434  }
   0x9   :  { %381 = vmatpush3.bf16.msra.mxu0 %v378_v7  ;;  %v383_v18 = vpack.c.bf16 %v194_v17, %v193_v16  ;;  %v195_v20 = vld [vmem:[%s542_s3 + $0x10] sm:$0xff]  ;;  %v196_v21 = vld [vmem:[%s542_s3 + $0x18] sm:$0xff]  ;;  %371 = vmatprep.mubr.msk.f32.mxu1 %vm431_vm2, %v432_v23  ;;  %vm212_vm6 = vcmask 1043459   ;;  %v331_v7 = vld [vmem:[%s543_s4] ss:$0 sm:$0xff]  ;;  %vm287_vm7 = vcmask 519168  }
   0xa   :  { %355 = vmatprep.subr.msk.mxu0 %vm43_vm1, %v29_v11  ;;  %157 = vperm.xlu1 %394, %v139_v12   ;;  %v386_v22 = vpack.c.bf16 %v196_v21, %v195_v20  ;;  %vm295_vm8 = vcmask 517120   ;;  %s433_s4 = smov [#allocation2]  }
   0xb   :  { %384 = vmatpush3.bf16.msra.mxu1 %v383_v18  ;;  %s318_s25 = sshll.u32 %s433_s4, 4  ;;  %s319_s25 = int_to_ptr.vmem [resolvable:$true] %s318_s25 }
   0xc   :  { %385 = vmatprep.subr.bf16.mxu1 %v430_v19  ;;  %s405_s26 = scalar_lea.vmem %s319_s25, 32  ;;  %p410_p1 = scmp.lt.s32.totalorder %s319_s25, %s319_s25 }
   0xd   :  { %356 = vmatpush3.msk.msra.mxu0 %vm43_vm1, %v29_v11  ;;  %p406_p0 = scmp.ne.s32.totalorder %s319_s25, %s405_s26  ;;  %p411_p2 = scmp.lt.s32.totalorder %s405_s26, %s405_s26 }
   0xe   :  { %358 = vmatmul.mubr.msk.f32.vlgmr.msra.gmra.mrb[0].mxu0 %vm30_vm0, %v22_v13 }
   0xf   :  { %360 = vmatprep.mubr.msk.f32.mxu0 %vm30_vm0, %v23_v14  ;;  %387 = vmatpush3.bf16.msra.mxu1 %v386_v22  ;;  %p412_p3 = por %p411_p2, %p410_p1 }
  0x11   :  { %p413_p4 = pnand %p412_p3, %p406_p0 }
  0x12   :  { %361 = vmatmul.mubr.msk.f32.gmra.mrb[2].mxu0 %vm30_vm0, %v24_v15 }
  0x83   :  { %v143_v26 = vpop.permute.xlu0 %142 }
  0x85   :  { %v153_v29 = vpop.permute.xlu1 %152 }
  0x87   :  { %v148_v30 = vpop.permute.xlu0 %147 }
  0x89   :  { %v158_v39 = vpop.permute.xlu1 %157 }
  0xe1   :  { %v359_v24 = vpop.f32.mrb[0].mxu0 }
  0xe2   :  { %395 = vtanh.f32 %v359_v24  ;;  %v113_v25 = vpop.f32.mrb[1].mxu0 }
  0xe3   :  { %397 = vtanh.f32 %v113_v25 }
  0xe5   :  { %v362_v27 = vpop.f32.mrb[2].mxu0 }
  0xe6   :  { %399 = vtanh.f32 %v362_v27  ;;  %v123_v28 = vpop.f32.mrb[3].mxu0 }
  0xe7   :  { %401 = vtanh.f32 %v123_v28 }
  0xec   :  { %v396_v31 = vpop.eup %395 }
  0xed   :  { %v398_v32 = vpop.eup %397  ;;  %v161_v33 = vmul.f32 %v396_v31, %v148_v30 }
  0xee   :  { %v160_v34 = vmul.f32 %v398_v32, %v143_v26 }
  0xef   :  { %v172_v35 = vsel %vm164_vm3, %v161_v33, 0.0 }
  0xf0   :  { %v400_v36 = vpop.eup %399  ;;  %v165_v37 = vsel %vm164_vm3, %v160_v34, 0.0  ;;  %v173_v38 = vrot.slane %v172_v35, 4 }
  0xf1   :  { %v402_v40 = vpop.eup %401  ;;  %v166_v41 = vrot.slane %v165_v37, 4  ;;  %v163_v42 = vmul.f32 %v400_v36, %v158_v39 }
  0xf2   :  { %v162_v43 = vmul.f32 %v402_v40, %v153_v29  ;;  %v174_v44 = vadd.f32 %v173_v38, %v172_v35 }
  0xf3   :  { %v167_v45 = vadd.f32 %v166_v41, %v165_v37  ;;  %v186_v46 = vsel %vm164_vm3, %v163_v42, 0.0 }
  0xf4   :  { %v179_v47 = vsel %vm164_vm3, %v162_v43, 0.0  ;;  %v175_v48 = vrot.slane %v174_v44, 2  ;;  %v187_v49 = vrot.slane %v186_v46, 4 }
  0xf5   :  { %v168_v50 = vrot.slane %v167_v45, 2  ;;  %v180_v51 = vrot.slane %v179_v47, 4 }
  0xf6   :  { %v176_v52 = vadd.f32 %v175_v48, %v174_v44  ;;  %v188_v53 = vadd.f32 %v187_v49, %v186_v46 }
  0xf7   :  { %v169_v54 = vadd.f32 %v168_v50, %v167_v45  ;;  %v181_v55 = vadd.f32 %v180_v51, %v179_v47 }
  0xf8   :  { %v177_v56 = vrot.slane %v176_v52, 1  ;;  %v189_v57 = vrot.slane %v188_v53, 2 }
  0xf9   :  { %v170_v58 = vrot.slane %v169_v54, 1  ;;  %v182_v59 = vrot.slane %v181_v55, 2 }
  0xfa   :  { %v178_v60 = vadd.f32 %v177_v56, %v176_v52  ;;  %v190_v61 = vadd.f32 %v189_v57, %v188_v53 }
  0xfb   :  { %v171_v62 = vadd.f32 %v170_v58, %v169_v54  ;;  %v183_v63 = vadd.f32 %v182_v59, %v181_v55 }
  0xfc   :  { %v191_v0 = vrot.slane %v190_v61, 1 }
  0xfd   :  { %v184_v1 = vrot.slane %v183_v63, 1  ;;  %v209_v2 = vsel %vm208_vm4, %v178_v60, %v171_v62 }
  0xfe   :  { %v192_v4 = vadd.f32 %v191_v0, %v190_v61 }
  0xff   :  { %v185_v3 = vadd.f32 %v184_v1, %v183_v63 }
 0x101   :  { %v211_v5 = vsel %vm210_vm5, %v185_v3, %v209_v2 }
 0x102   :  { %v213_v6 = vsel %vm212_vm6, %v192_v4, %v211_v5 }
 0x103   :  { %372 = vmatmul.mubr.msk.f32.vlgmr.msra.gmra.mrb[0].mxu1 %vm164_vm3, %v213_v6 }
 0x1d6   :  { %v282_v8 = vpop.f32.mrb[0].mxu1 }
 0x1d7   :  { %v283_v9 = vadd.f32 %v331_v7, %v282_v8  ;;  %v373_v10 = vpop.f32.mrb[1].mxu1 }
 0x1d9   :  { %v286_v11 = vmul.f32 %v283_v9, %v283_v9  ;;  %v292_v12 = vrot.slane %v283_v9, 2 }
 0x1db   :  { %v288_v13 = vsel %vm287_vm7, %v286_v11, 0.0  ;;  %v294_v14 = vmul.f32 %v292_v12, %v283_v9 }
 0x1dc   :  { %289 = vadd.xlane.f32.xlu0 %v288_v13 }
 0x1dd   :  { %v296_v15 = vsel %vm295_vm8, %v294_v14, 0.0 }
 0x1de   :  { %297 = vadd.xlane.f32.xlu1 %v296_v15 }
 0x269   :  { %v290_v16 = vpop.xlane.xlu0 %289 }
 0x26a   :  { %v299_v17 = vmax.f32 %v290_v16, 1e-16 }
 0x26b   :  { %v298_v21 = vpop.xlane.xlu1 %297 }
 0x26c   :  { %v301_v18 = vrot.slane %v299_v17, 2 }
 0x26e   :  { %v303_v19 = vmul.f32 %v301_v18, %v299_v17 }
 0x270   :  { %403 = vrsqrt.f32 %v303_v19 }
 0x27a   :  { %v404_v20 = vpop.eup %403 }
 0x27b   :  { %v305_v22 = vmul.f32 %v404_v20, %v298_v21 }
 0x27d   :  { %308 = vperm.xlu0 %393, %v305_v22  }
 0x2fc   :  { %v309_v23 = vpop.permute.xlu0 %308 }
 0x2fd   :  { %311 = vst [vmem:[#allocation2] sm:$0x3] %v309_v23 }
 0x2fe   :  { %416 = shalt.err (!%p413_p4)
}
 0x2ff   :  { %s417_s29 = scalar_lea.hbm %s544_s5, 32 }
 0x300   :  { %p418_p5 = scmp.ne.s32.totalorder %s544_s5, %s417_s29  ;;  %p421_p6 = scmp.lt.u32.totalorder %s417_s29, %s544_s5 }
 0x302   :  { %p423_p7 = pnand %p421_p6, %p418_p5 }
 0x304   :  { %426 = shalt.err (!%p423_p7)
}
 0x305   :  { %321 = dma.vmem_to_hbm [thread:$0]  %s319_s25, 32, %s544_s5, [#allocation3]  }
 0x306   :  { %427 = dma.done.wait [#allocation3], 32  }
 0x307   :  { %428 = vsyncadd [#allocation3], 4294967264 }
 0x308   :  { %325 = vsyncpa [#allocation3], 1 }

</bundles_post_ra>
